<compile_context>
chip_gen: v5e
topology: v5e:2x2
jax: 0.10.0
libtpu: 0.0.40
codegen_flags: <defaults>
</compile_context>

<pallas_src>
import jax
import jax.numpy as jnp
from jax.experimental import pallas as pl
from jax.experimental.pallas import tpu as pltpu

LANE = 128
RESIDENT_H_BYTES = 12 << 20  # resident-H cap (x2 buffered stays well inside v7x's 64 MiB VMEM)


def _round_up(x, m):
    return (x + m - 1) // m * m


def _pad2(a, rows, cols):
    out = jnp.zeros((rows, cols), a.dtype)
    return out.at[: a.shape[0], : a.shape[1]].set(a)


def _largest_tile(n_pad, cap):
    """Largest multiple of 128 that is <= cap and divides n_pad (n_pad % 128 == 0)."""
    t = max((min(cap, n_pad) // 128) * 128, 128)
    while n_pad % t:
        t -= 128
    return t


def _choose_tiles(n_pad):
    """Row/K tile sizes: big tiles to amortize the per-step overhead, both dividing n_pad.
    The parallel row axis keeps >=2 tiles (even count when possible) so both v7x TCs get work."""
    if n_pad <= 128:
        return n_pad, n_pad
    if n_pad % 256 == 0:
        tm = _largest_tile(n_pad // 2, 512)          # n_pad // tm is even and >= 2
    else:
        tm = _largest_tile(n_pad, min(512, n_pad - 128))  # still >= 2 row tiles
    tk = _largest_tile(n_pad, 2048)
    return tm, tk


def _vmem_limit_bytes(n_pad, tm, tk, f_in, f_out, resident, has_mask):
    b = 2 * tm * tk * 2                       # double-buffered A tiles (bf16)
    if resident:
        b += 2 * n_pad * f_in * 2             # resident H (counted x2 conservatively)
    else:
        b += 2 * tk * f_in * 2                # streamed neighbor-H tiles (bf16)
        b += 2 * tm * f_in * 4                # streamed self-feature tiles (f32)
    b += 2 * tm * LANE * 4                    # inv_deg row tiles (lane-padded)
    b += 2 * 2 * f_in * f_out * 4             # stacked [W_self; W_neigh] (f32)
    b += 2 * 8 * f_out * 4                    # bias (sublane-padded)
    b += 2 * tm * f_out * 4                   # output tiles
    if has_mask:
        b += 2 * tm * f_out * 2               # dropout mask tiles (bf16)
    b += tm * f_in * 4                        # accumulator scratch
    # 8 MiB headroom for compiler temporaries; cap at 48 MiB so it also fits v7x's 64 MiB VMEM
    return int(min(max(b + (8 << 20), 32 << 20), 48 << 20))


def _make_sage_layer_kernel(f_in, tm, tk, activation, valid_cols, has_mask, resident_h):
    """One SAGEConv('mean') layer:
       out = act( [h_self, (1/deg) * sum_nb(h)] @ [W_self; W_neigh] + b )."""

    def kernel(*refs):
        if resident_h:
            if has_mask:
                a_ref, hnb_ref, invdeg_ref, w_ref, b_ref, mask_ref, out_ref, acc_ref = refs
            else:
                a_ref, hnb_ref, invdeg_ref, w_ref, b_ref, out_ref, acc_ref = refs
                mask_ref = None
            hself_ref = None
        else:
            if has_mask:
                (a_ref, hnb_ref, hself_ref, invdeg_ref, w_ref, b_ref,
                 mask_ref, out_ref, acc_ref) = refs
            else:
                (a_ref, hnb_ref, hself_ref, invdeg_ref, w_ref, b_ref,
                 out_ref, acc_ref) = refs
                mask_ref = None

        i = pl.program_id(0)
        k = pl.program_id(1)

        @pl.when(k == 0)
        def _init():
            acc_ref[...] = jnp.zeros_like(acc_ref)

        # Partial neighbor-sum over this K tile of the (exact, binary) bf16 adjacency:
        #   acc += A_bin[i_tile, k_tile] @ H[k_tile]   (bf16 operands, f32 MXU accumulation).
        if resident_h:
            koff = pl.multiple_of(k * tk, 128)
            h_tile = hnb_ref[pl.ds(koff, tk), :]
        else:
            h_tile = hnb_ref[...]
        acc_ref[...] += jnp.dot(a_ref[...], h_tile, preferred_element_type=jnp.float32)

        @pl.when(k == pl.num_programs(1) - 1)
        def _finalize():
            # Exact mean: apply the f32 1/deg row scale once, at the end of the K reduction.
            nb = acc_ref[...] * invdeg_ref[...]
            if resident_h:
                ioff = pl.multiple_of(i * tm, 128)
                self_f = hnb_ref[pl.ds(ioff, tm), :].astype(jnp.float32)
            else:
                self_f = hself_ref[...]
            # One fused projection: [h_self, h_neigh] @ [W_self; W_neigh] + b   (f32).
            feats = jnp.concatenate([self_f, nb], axis=-1)
            out = jnp.dot(feats, w_ref[...], preferred_element_type=jnp.float32) + b_ref[...]

            if activation == "relu":
                out = jnp.maximum(out, 0.0)
                if mask_ref is not None:
                    # inverted dropout: mask holds 0 or 1/(1-p) (exact in bf16)
                    out = out * mask_ref[...].astype(jnp.float32)
            else:  # softmax over the real (unpadded) feature columns only; stays in f32
                col = jax.lax.broadcasted_iota(jnp.int32, out.shape, 1)
                logits = jnp.where(col < valid_cols, out, -1e30)
                m = jnp.max(logits, axis=-1, keepdims=True)
                e = jnp.exp(logits - m)
                s = jnp.sum(e, axis=-1, keepdims=True)
                out = e / s

            out_ref[...] = out

    return kernel


def _sage_layer(a_bin, h, inv_deg, w_stacked, b, *, tm, tk, activation,
                valid_cols=0, drop_mask=None):
    n_pad = a_bin.shape[0]
    f_in = h.shape[1]
    f_out = w_stacked.shape[1]
    grid = (n_pad // tm, n_pad // tk)
    resident = (n_pad * f_in * 2) <= RESIDENT_H_BYTES
    has_mask = drop_mask is not None

    h_bf16 = h.astype(jnp.bfloat16)

    in_specs = [pl.BlockSpec((tm, tk), lambda i, k: (i, k))]        # streamed A tile (bf16)
    args = [a_bin]
    if resident:
        # Full H kept VMEM-resident across the whole grid (constant block index -> single DMA).
        in_specs.append(pl.BlockSpec((n_pad, f_in), lambda i, k: (0, 0)))
        args.append(h_bf16)
    else:
        in_specs.append(pl.BlockSpec((tk, f_in), lambda i, k: (k, 0)))   # neighbor K tile
        args.append(h_bf16)
        in_specs.append(pl.BlockSpec((tm, f_in), lambda i, k: (i, 0)))   # self row tile (f32)
        args.append(h)
    in_specs.append(pl.BlockSpec((tm, 1), lambda i, k: (i, 0)))          # 1/deg row scale (f32)
    args.append(inv_deg)
    in_specs.append(pl.BlockSpec((2 * f_in, f_out), lambda i, k: (0, 0)))  # [W_self; W_neigh]
    args.append(w_stacked)
    in_specs.append(pl.BlockSpec((1, f_out), lambda i, k: (0, 0)))        # bias
    args.append(b)
    if has_mask:
        in_specs.append(pl.BlockSpec((tm, f_out), lambda i, k: (i, 0)))   # dropout mask (bf16)
        args.append(drop_mask)

    kernel = _make_sage_layer_kernel(f_in, tm, tk, activation, valid_cols,
                                     has_mask, resident)

    return pl.pallas_call(
        kernel,
        out_shape=jax.ShapeDtypeStruct((n_pad, f_out), jnp.float32),
        grid=grid,
        in_specs=in_specs,
        out_specs=pl.BlockSpec((tm, f_out), lambda i, k: (i, 0)),
        scratch_shapes=[pltpu.VMEM((tm, f_in), jnp.float32)],
        compiler_params=pltpu.CompilerParams(
            dimension_semantics=("parallel", "arbitrary"),
            vmem_limit_bytes=_vmem_limit_bytes(n_pad, tm, tk, f_in, f_out,
                                               resident, has_mask),
        ),
    )(*args)


def graphsage_forward(adj, x, params, drop_mask=None):
    """adj: [N, N] binary (0/1) adjacency (edge j->i at adj[i, j]); x: [N, in_feats].
    drop_mask: optional [N, r_feats] inverted-dropout mask (0 or 1/(1-p)) applied after conv2."""
    n, in_feats = x.shape
    h_feats = params["ws1"].shape[1]
    r_feats = params["ws3"].shape[1]

    # --- tiling: nodes padded to a multiple of 128, features padded to 128 lanes ---
    n_pad = _round_up(max(n, 1), 128)
    tm, tk = _choose_tiles(n_pad)

    f_in = _round_up(in_feats, LANE)
    f_h = _round_up(h_feats, LANE)
    f_r = _round_up(r_feats, LANE)

    # Exact binary bf16 adjacency; the per-row 1/deg mean scale is applied in f32 in-kernel.
    a_pad = _pad2(adj, n_pad, n_pad)
    deg = jnp.sum(a_pad, axis=1, keepdims=True)
    inv_deg = 1.0 / jnp.clip(deg, 1.0, None)                 # (n_pad, 1) f32
    a_bin = a_pad.astype(jnp.bfloat16)

    x_pad = _pad2(x, n_pad, f_in)

    def stack_w(ws, wn, fi, fo):
        return jnp.concatenate([_pad2(ws, fi, fo), _pad2(wn, fi, fo)], axis=0)

    w1 = stack_w(params["ws1"], params["wn1"], f_in, f_h)
    w2 = stack_w(params["ws2"], params["wn2"], f_h, f_r)
    w3 = stack_w(params["ws3"], params["wn3"], f_r, f_r)
    b1 = _pad2(params["b1"], 1, f_h)
    b2 = _pad2(params["b2"], 1, f_r)
    b3 = _pad2(params["b3"], 1, f_r)

    mask_p = None
    if drop_mask is not None:
        mask_p = _pad2(drop_mask.astype(jnp.bfloat16), n_pad, f_r)

    h = _sage_layer(a_bin, x_pad, inv_deg, w1, b1, tm=tm, tk=tk, activation="relu")
    h = _sage_layer(a_bin, h, inv_deg, w2, b2, tm=tm, tk=tk, activation="relu",
                    drop_mask=mask_p)
    h = _sage_layer(a_bin, h, inv_deg, w3, b3, tm=tm, tk=tk, activation="softmax",
                    valid_cols=r_feats)
    return h[:n, :r_feats]


if __name__ == "__main__":
    # small, deterministic synthetic problem
    N, in_feats, h_feats, r_feats = 16, 8, 32, 16
    drop_p = 0.5

    key = jax.random.PRNGKey(0)
    kadj, kx, k1, k2, k3, k4, k5, k6, kdrop = jax.random.split(key, 9)

    # random directed graph; mean aggregation = (A / deg) @ h with A binary
    adj = (jax.random.uniform(kadj, (N, N)) < 0.3).astype(jnp.float32)
    deg = jnp.clip(jnp.sum(adj, axis=1, keepdims=True), 1.0, None)
    adj_norm = adj / deg

    x = jax.random.normal(kx, (N, in_feats), dtype=jnp.float32)

    def lin(k, fi, fo):
        return (jax.random.normal(k, (fi, fo), dtype=jnp.float32)
                * (1.0 / jnp.sqrt(jnp.float32(fi))))

    params = {
        "ws1": lin(k1, in_feats, h_feats),
        "wn1": lin(k2, in_feats, h_feats),
        "b1":  jnp.zeros((1, h_feats), jnp.float32),
        "ws2": lin(k3, h_feats, r_feats),
        "wn2": lin(k4, h_feats, r_feats),
        "b2":  jnp.zeros((1, r_feats), jnp.float32),
        "ws3": lin(k5, r_feats, r_feats),
        "wn3": lin(k6, r_feats, r_feats),
        "b3":  jnp.zeros((1, r_feats), jnp.float32),
    }

    # F.dropout(h, p) defaults to training=True -> inverted-dropout mask (0 or 1/(1-p))
    keep = jax.random.bernoulli(kdrop, 1.0 - drop_p, (N, r_feats))
    drop_mask = keep.astype(jnp.float32) / (1.0 - drop_p)

    out = graphsage_forward(adj, x, params, drop_mask)
    jax.block_until_ready(out)

    # pure-JAX reference (same dropout mask) for a tolerance check
    def sage_ref(h, ws, wn, b):
        return h @ ws + (adj_norm @ h) @ wn + b

    h = jnp.maximum(sage_ref(x, params["ws1"], params["wn1"], params["b1"]), 0.0)
    h = jnp.maximum(sage_ref(h, params["ws2"], params["wn2"], params["b2"]), 0.0)
    h = h * drop_mask
    h = sage_ref(h, params["ws3"], params["wn3"], params["b3"])
    ref = jax.nn.softmax(h, axis=-1)

    assert out.shape == (N, r_feats)
    assert bool(jnp.allclose(jnp.sum(out, axis=-1), 1.0, atol=1e-5))
    assert bool(jnp.allclose(out, ref, atol=5e-2)), float(jnp.max(jnp.abs(out - ref)))
    print("KERNEL_OK")
</pallas_src>

<mosaic_0001>
module attributes {stable_mosaic.version = 11 : i64} {
  func.func @kernel(%arg0: i32, %arg1: i32, %arg2: memref<128x128xbf16, #tpu.memory_space<vmem>>, %arg3: memref<128x128xbf16, #tpu.memory_space<vmem>>, %arg4: memref<128x1xf32, #tpu.memory_space<vmem>>, %arg5: memref<256x128xf32, #tpu.memory_space<vmem>>, %arg6: memref<1x128xf32, #tpu.memory_space<vmem>>, %arg7: memref<128x128xf32, #tpu.memory_space<vmem>>, %arg8: memref<128x128xf32, #tpu.memory_space<vmem>>) attributes {dimension_semantics = [#tpu.dimension_semantics<parallel>, #tpu.dimension_semantics<arbitrary>], iteration_bounds = array<i64: 1, 1>, scalar_prefetch = 0 : i64, scratch_operands = 1 : i64, tpu.core_type = #tpu.core_type<tc>, window_params = [{transform_indices = @transform_0, window_bounds = array<i64: 128, 128>}, {pipeline_mode = #tpu.pipeline_mode<synchronous>, transform_indices = @transform_1, window_bounds = array<i64: 128, 128>}, {transform_indices = @transform_2, window_bounds = array<i64: 128, 1>}, {pipeline_mode = #tpu.pipeline_mode<synchronous>, transform_indices = @transform_3, window_bounds = array<i64: 256, 128>}, {pipeline_mode = #tpu.pipeline_mode<synchronous>, transform_indices = @transform_4, window_bounds = array<i64: 1, 128>}, {transform_indices = @transform_5, window_bounds = array<i64: 128, 128>}]} {
    %c0_i32 = arith.constant 0 : i32
    %0 = arith.cmpi eq, %arg1, %c0_i32 : i32
    %1 = arith.extui %0 : i1 to i32
    %c0_i32_0 = arith.constant 0 : i32
    %2 = arith.cmpi ne, %1, %c0_i32_0 : i32
    scf.if %2 {
      %cst_9 = arith.constant 0.000000e+00 : f32
      %15 = vector.broadcast %cst_9 : f32 to vector<128x128xf32>
      %c0_10 = arith.constant 0 : index
      %c0_11 = arith.constant 0 : index
      %16 = vector.load %arg8[%c0_10, %c0_11] : memref<128x128xf32, #tpu.memory_space<vmem>>, vector<128x128xf32>
      tpu.vector_store %arg8[%c0_10, %c0_11], %15 {strides = array<i32>} : memref<128x128xf32, #tpu.memory_space<vmem>>, vector<128x128xf32>,
    } else {
    }
    %c128_i32 = arith.constant 128 : i32
    %3 = arith.muli %arg1, %c128_i32 : i32
    %4 = tpu.assume_multiple %3, 128 : i32
    %5 = arith.index_cast %4 : i32 to index
    %c0 = arith.constant 0 : index
    %6 = vector.load %arg3[%5, %c0] : memref<128x128xbf16, #tpu.memory_space<vmem>>, vector<128x128xbf16>
    %c0_1 = arith.constant 0 : index
    %c0_2 = arith.constant 0 : index
    %7 = vector.load %arg8[%c0_1, %c0_2] : memref<128x128xf32, #tpu.memory_space<vmem>>, vector<128x128xf32>
    %c0_3 = arith.constant 0 : index
    %c0_4 = arith.constant 0 : index
    %8 = vector.load %arg2[%c0_3, %c0_4] : memref<128x128xbf16, #tpu.memory_space<vmem>>, vector<128x128xbf16>
    %cst = arith.constant dense<0.000000e+00> : vector<128x128xf32>
    %9 = tpu.matmul %8, %6, %cst {dimension_numbers = #tpu.dot_dimension_numbers<[1], [0], [0], [1], [0, 0, 1, 1], [], []>} : vector<128x128xbf16>, vector<128x128xbf16>, vector<128x128xf32> -> vector<128x128xf32>
    %10 = arith.addf %7, %9 : vector<128x128xf32>
    %c0_5 = arith.constant 0 : index
    %c0_6 = arith.constant 0 : index
    %11 = vector.load %arg8[%c0_5, %c0_6] : memref<128x128xf32, #tpu.memory_space<vmem>>, vector<128x128xf32>
    tpu.vector_store %arg8[%c0_5, %c0_6], %10 {strides = array<i32>} : memref<128x128xf32, #tpu.memory_space<vmem>>, vector<128x128xf32>,
    %c0_i32_7 = arith.constant 0 : i32
    %12 = arith.cmpi eq, %arg1, %c0_i32_7 : i32
    %13 = arith.extui %12 : i1 to i32
    %c0_i32_8 = arith.constant 0 : i32
    %14 = arith.cmpi ne, %13, %c0_i32_8 : i32
    scf.if %14 {
      %c0_9 = arith.constant 0 : index
      %c0_10 = arith.constant 0 : index
      %15 = vector.load %arg8[%c0_9, %c0_10] : memref<128x128xf32, #tpu.memory_space<vmem>>, vector<128x128xf32>
      %c0_11 = arith.constant 0 : index
      %c0_12 = arith.constant 0 : index
      %16 = vector.load %arg4[%c0_11, %c0_12] : memref<128x1xf32, #tpu.memory_space<vmem>>, vector<128x1xf32>
      %17 = vector.broadcast %16 : vector<128x1xf32> to vector<128x128xf32>
      %18 = arith.mulf %15, %17 : vector<128x128xf32>
      %c128_i32_13 = arith.constant 128 : i32
      %19 = arith.muli %arg0, %c128_i32_13 : i32
      %20 = tpu.assume_multiple %19, 128 : i32
      %21 = arith.index_cast %20 : i32 to index
      %c0_14 = arith.constant 0 : index
      %22 = vector.load %arg3[%21, %c0_14] : memref<128x128xbf16, #tpu.memory_space<vmem>>, vector<128x128xbf16>
      %23 = arith.extf %22 : vector<128x128xbf16> to vector<128x128xf32>
      %24 = tpu.concatenate %23, %18 in 1 : vector<128x128xf32>, vector<128x128xf32> -> vector<128x256xf32>
      %c0_15 = arith.constant 0 : index
      %c0_16 = arith.constant 0 : index
      %25 = vector.load %arg5[%c0_15, %c0_16] : memref<256x128xf32, #tpu.memory_space<vmem>>, vector<256x128xf32>
      %cst_17 = arith.constant dense<0.000000e+00> : vector<128x128xf32>
      %26 = tpu.matmul %24, %25, %cst_17 {dimension_numbers = #tpu.dot_dimension_numbers<[1], [0], [0], [1], [0, 0, 1, 1], [], []>} : vector<128x256xf32>, vector<256x128xf32>, vector<128x128xf32> -> vector<128x128xf32>
      %c0_18 = arith.constant 0 : index
      %c0_19 = arith.constant 0 : index
      %27 = vector.load %arg6[%c0_18, %c0_19] : memref<1x128xf32, #tpu.memory_space<vmem>>, vector<1x128xf32>
      %28 = vector.broadcast %27 : vector<1x128xf32> to vector<128x128xf32>
      %29 = arith.addf %26, %28 : vector<128x128xf32>
      %cst_20 = arith.constant 0.000000e+00 : f32
      %30 = vector.broadcast %cst_20 : f32 to vector<128x128xf32>
      %31 = arith.maximumf %29, %30 : vector<128x128xf32>
      %c0_21 = arith.constant 0 : index
      %c0_22 = arith.constant 0 : index
      %32 = vector.load %arg7[%c0_21, %c0_22] : memref<128x128xf32, #tpu.memory_space<vmem>>, vector<128x128xf32>
      tpu.vector_store %arg7[%c0_21, %c0_22], %31 {strides = array<i32>} : memref<128x128xf32, #tpu.memory_space<vmem>>, vector<128x128xf32>,
    } else {
    }
    return
  }
  func.func @transform_0(%arg0: i32, %arg1: i32) -> (i32, i32) {
    %c0_i32 = arith.constant 0 : i32
    return %arg0, %arg1 : i32, i32
  }
  func.func @transform_1(%arg0: i32, %arg1: i32) -> (i32, i32) {
    %c0_i32 = arith.constant 0 : i32
    %c0_i32_0 = arith.constant 0 : i32
    %c0_i32_1 = arith.constant 0 : i32
    return %c0_i32, %c0_i32_0 : i32, i32
  }
  func.func @transform_2(%arg0: i32, %arg1: i32) -> (i32, i32) {
    %c0_i32 = arith.constant 0 : i32
    %c0_i32_0 = arith.constant 0 : i32
    return %arg0, %c0_i32 : i32, i32
  }
  func.func @transform_3(%arg0: i32, %arg1: i32) -> (i32, i32) {
    %c0_i32 = arith.constant 0 : i32
    %c0_i32_0 = arith.constant 0 : i32
    %c0_i32_1 = arith.constant 0 : i32
    return %c0_i32, %c0_i32_0 : i32, i32
  }
  func.func @transform_4(%arg0: i32, %arg1: i32) -> (i32, i32) {
    %c0_i32 = arith.constant 0 : i32
    %c0_i32_0 = arith.constant 0 : i32
    %c0_i32_1 = arith.constant 0 : i32
    return %c0_i32, %c0_i32_0 : i32, i32
  }
  func.func @transform_5(%arg0: i32, %arg1: i32) -> (i32, i32) {
    %c0_i32 = arith.constant 0 : i32
    %c0_i32_0 = arith.constant 0 : i32
    return %arg0, %c0_i32 : i32, i32
  }
}

</mosaic_0001>

<bundles_post_ra>
// kernel: tpu_custom_call.1
= control target key start
LH: loop header
LB: loop body
LE: loop exit
PB: predicated region body
PF: predicated region fallthrough
CT: control target
= control target key end

     0   :  { %10 = vsyncpa [#allocation4], 0  ;;  %s1084_s0 = inlined_call_operand.vmem [shape: bf16[128,128], index: 0, kind: input, shape index: {}]   ;;  %s1085_s1 = inlined_call_operand.vmem [shape: bf16[128,128], index: 1, kind: input, shape index: {}]   ;;  %s1086_s2 = inlined_call_operand.vmem [shape: f32[128,1], index: 2, kind: input, shape index: {}]   ;;  %s1087_s3 = inlined_call_operand.hbm [shape: f32[256,128], index: 3, kind: input, shape index: {}]   ;;  %s1088_s4 = inlined_call_operand.vmem [shape: f32[1,128], index: 4, kind: input, shape index: {}]   ;;  %s1089_s5 = inlined_call_operand.hbm [shape: f32[128,128], index: 5, kind: output, shape index: {}]  }
   0x1   :  { %11 = vsyncpa [#allocation5], 0  ;;  %s22_s20 = sshll.u32 %s1087_s3, 4  ;;  %s896_s21 = smov [#allocation3]   ;;  %s23_s20 = int_to_ptr.hbm [resolvable:$true] %s22_s20 }
   0x2   :  { %s24_s22 = sshll.u32 %s896_s21, 4  ;;  %s897_s23 = smov 128   ;;  %s25_s22 = int_to_ptr.vmem [resolvable:$true] %s24_s22 }
   0x3   :  { %s898_s24 = smov 8  }
   0x4   :  { %30 = dma.hbm_to_vmem [thread:$0]  %s23_s20, 4096, %s25_s22, [#allocation4], %s897_s23, %s897_s23, %s898_s24  }
   0x5   :  { %892 = dma.done.wait [#allocation4], 4096  }
   0x6   :  { %893 = vsyncadd [#allocation4], 4294963200  ;;  %v899_v0 = vmov 0   ;;  %v747_v1 = vld [vmem:[%s1085_s1 + $0x38] sm:$0xff]  ;;  %v306_v2 = vld [vmem:[%s1086_s2] sm:$0xff]  ;;  %s659_s9 = sshll.u32 %s1089_s5, 4  ;;  %s660_s9 = int_to_ptr.hbm [resolvable:$true] %s659_s9 }
   0x7   :  { %840 = vset.pattern.permute.xlu0 %v899_v0  ;;  %841 = vset.pattern.permute.xlu1 %v899_v0  ;;  %v746_v3 = vld [vmem:[%s1085_s1 + $0x30] sm:$0xff]  ;;  %v745_v5 = vld [vmem:[%s1085_s1 + $0x28] sm:$0xff]  ;;  %v309_v7 = vld [vmem:[%s1086_s2 + $0x18] sm:$0xff] }
   0x8   :  { %842 = vset.pattern.permute.xlu2 %v899_v0  ;;  %324 = vperm.xlu0 %840, %v306_v2   ;;  %v308_v4 = vld [vmem:[%s1086_s2 + $0x10] sm:$0xff]  ;;  %v307_v6 = vld [vmem:[%s1086_s2 + $0x8] sm:$0xff]  ;;  %v744_v8 = vld [vmem:[%s1085_s1 + $0x20] sm:$0xff] }
   0x9   :  { %206 = vmatpush.bf16.msra.mxu0 %v747_v1  ;;  %795 = vmatpush.bf16.msra.mxu3 %v747_v1  ;;  %v743_v9 = vld [vmem:[%s1085_s1 + $0x18] sm:$0xff]  ;;  %v312_v10 = vld [vmem:[%s1086_s2 + $0x30] sm:$0xff]  ;;  %v310_v12 = vld [vmem:[%s1086_s2 + $0x20] sm:$0xff] }
   0xa   :  { %334 = vperm.xlu1 %841, %v308_v4   ;;  %v313_v11 = vld [vmem:[%s1086_s2 + $0x38] sm:$0xff]  ;;  %v742_v13 = vld [vmem:[%s1085_s1 + $0x10] sm:$0xff]  ;;  %344 = vperm.xlu2 %842, %v310_v12   ;;  %v741_v14 = vld [vmem:[%s1085_s1 + $0x8] sm:$0xff] }
   0xb   :  { %v318_v15 = vld [vmem:[%s1086_s2 + $0x60] sm:$0xff]  ;;  %v315_v16 = vld [vmem:[%s1086_s2 + $0x48] sm:$0xff]  ;;  %v754_v19 = vld [vmem:[%s1084_s0 + $0x30] sm:$0xff] }
   0xc   :  { %v740_v17 = vld [vmem:[%s1085_s1] sm:$0xff]  ;;  %v316_v20 = vld [vmem:[%s1086_s2 + $0x50] sm:$0xff]  ;;  %v311_v22 = vld [vmem:[%s1086_s2 + $0x28] sm:$0xff] }
   0xd   :  { %207 = vmatpush.bf16.msra.mxu0 %v746_v3  ;;  %796 = vmatpush.bf16.msra.mxu3 %v746_v3  ;;  %v748_v18 = vld [vmem:[%s1084_s0] sm:$0xff]  ;;  %v320_v21 = vld [vmem:[%s1086_s2 + $0x70] sm:$0xff]  ;;  %v321_v23 = vld [vmem:[%s1086_s2 + $0x78] sm:$0xff] }
   0xe   :  { %v314_v24 = vld [vmem:[%s1086_s2 + $0x40] sm:$0xff]  ;;  %v749_v25 = vld [vmem:[%s1084_s0 + $0x8] sm:$0xff]  ;;  %v755_v26 = vld [vmem:[%s1084_s0 + $0x38] sm:$0xff] }
   0xf   :  { %v319_v27 = vld [vmem:[%s1086_s2 + $0x68] sm:$0xff]  ;;  %v750_v28 = vld [vmem:[%s1084_s0 + $0x10] sm:$0xff]  ;;  %v317_v29 = vld [vmem:[%s1086_s2 + $0x58] sm:$0xff] }
  0x10   :  { %329 = vperm.xlu0 %840, %v307_v6   ;;  %v470_v30 = vld [vmem:[#allocation3 + $0x78] sm:$0xff]  ;;  %v469_v31 = vld [vmem:[#allocation3 + $0x70] sm:$0xff]  ;;  %v468_v32 = vld [vmem:[#allocation3 + $0x68] sm:$0xff] }
  0x11   :  { %208 = vmatpush.bf16.msra.mxu0 %v745_v5  ;;  %797 = vmatpush.bf16.msra.mxu3 %v745_v5  ;;  %v467_v33 = vld [vmem:[#allocation3 + $0x60] sm:$0xff]  ;;  %v466_v34 = vld [vmem:[#allocation3 + $0x58] sm:$0xff]  ;;  %v465_v36 = vld [vmem:[#allocation3 + $0x50] sm:$0xff] }
  0x12   :  { %339 = vperm.xlu1 %841, %v309_v7   ;;  %349 = vperm.xlu2 %842, %v311_v22   ;;  %v751_v35 = vld [vmem:[%s1084_s0 + $0x18] sm:$0xff]  ;;  %v464_v37 = vld [vmem:[#allocation3 + $0x48] sm:$0xff]  ;;  %v463_v38 = vld [vmem:[#allocation3 + $0x40] sm:$0xff] }
  0x13   :  { %491 = vmatpush.msra.mxu1 %v470_v30  ;;  %v462_v39 = vld [vmem:[#allocation3 + $0x38] sm:$0xff]  ;;  %v461_v40 = vld [vmem:[#allocation3 + $0x30] sm:$0xff]  ;;  %v460_v41 = vld [vmem:[#allocation3 + $0x28] sm:$0xff] }
  0x14   :  { %v459_v42 = vld [vmem:[#allocation3 + $0x20] sm:$0xff]  ;;  %v486_v43 = vld [vmem:[#allocation3 + $0xf8] sm:$0xff]  ;;  %v485_v44 = vld [vmem:[#allocation3 + $0xf0] sm:$0xff] }
  0x15   :  { %209 = vmatpush.bf16.msra.mxu0 %v744_v8  ;;  %798 = vmatpush.bf16.msra.mxu3 %v744_v8  ;;  %v752_v45 = vld [vmem:[%s1084_s0 + $0x20] sm:$0xff]  ;;  %v458_v46 = vld [vmem:[#allocation3 + $0x18] sm:$0xff]  ;;  %v484_v47 = vld [vmem:[#allocation3 + $0xe8] sm:$0xff] }
  0x16   :  { %492 = vmatpush.msra.mxu1 %v469_v31  ;;  %556 = vmatpush.msra.mxu2 %v486_v43  ;;  %v457_v48 = vld [vmem:[#allocation3 + $0x10] sm:$0xff]  ;;  %v456_v49 = vld [vmem:[#allocation3 + $0x8] sm:$0xff]  ;;  %v455_v50 = vld [vmem:[#allocation3] sm:$0xff] }
  0x17   :  { %v793_v51 = vld [vmem:[%s1085_s1 + $0x30] sm:$0xff]   ;;  %v483_v52 = vld [vmem:[#allocation3 + $0xe0] sm:$0xff]  ;;  %v482_v54 = vld [vmem:[#allocation3 + $0xd8] sm:$0xff] }
  0x18   :  { %354 = vperm.xlu0 %840, %v312_v10   ;;  %493 = vmatpush.msra.mxu1 %v468_v32  ;;  %v782_v53 = vunpack.c.l.bf16 %v793_v51  ;;  %v481_v55 = vld [vmem:[#allocation3 + $0xd0] sm:$0xff]  ;;  %v480_v56 = vld [vmem:[#allocation3 + $0xc8] sm:$0xff]  ;;  %v783_v57 = vunpack.c.h.bf16 %v793_v51  ;;  %v479_v58 = vld [vmem:[#allocation3 + $0xc0] sm:$0xff] }
  0x19   :  { %210 = vmatpush.bf16.msra.mxu0 %v743_v9  ;;  %799 = vmatpush.bf16.msra.mxu3 %v743_v9  ;;  %v478_v59 = vld [vmem:[#allocation3 + $0xb8] sm:$0xff]  ;;  %v753_v60 = vld [vmem:[%s1084_s0 + $0x28] sm:$0xff]  ;;  %v477_v61 = vld [vmem:[#allocation3 + $0xb0] sm:$0xff] }
  0x1a   :  { %359 = vperm.xlu1 %841, %v313_v11   ;;  %364 = vperm.xlu2 %842, %v314_v24   ;;  %v476_v62 = vld [vmem:[#allocation3 + $0xa8] sm:$0xff]  ;;  %v794_v63 = vld [vmem:[%s1085_s1 + $0x38] sm:$0xff]   ;;  %v475_v0 = vld [vmem:[#allocation3 + $0xa0] sm:$0xff] }
  0x1b   :  { %494 = vmatpush.msra.mxu1 %v467_v33  ;;  %557 = vmatpush.msra.mxu2 %v485_v44  ;;  %v474_v1 = vld [vmem:[#allocation3 + $0x98] sm:$0xff]  ;;  %v786_v2 = vunpack.c.l.bf16 %v794_v63  ;;  %v473_v3 = vld [vmem:[#allocation3 + $0x90] sm:$0xff]  ;;  %v472_v4 = vld [vmem:[#allocation3 + $0x88] sm:$0xff]  ;;  %v787_v5 = vunpack.c.h.bf16 %v794_v63 }
  0x1c   :  { %v471_v6 = vld [vmem:[#allocation3 + $0x80] sm:$0xff]  ;;  %v789_v24 = vld [vmem:[%s1085_s1 + $0x10] sm:$0xff]  }
  0x1d   :  { %211 = vmatpush.bf16.msra.mxu0 %v742_v13  ;;  %800 = vmatpush.bf16.msra.mxu3 %v742_v13  ;;  %v757_v7 = vld [vmem:[%s1085_s1] sm:$0xff]  }
  0x1e   :  { %495 = vmatpush.msra.mxu1 %v466_v34  ;;  %558 = vmatpush.msra.mxu2 %v484_v47  ;;  %v758_v8 = vunpack.c.l.bf16 %v757_v7  ;;  %v759_v10 = vunpack.c.h.bf16 %v757_v7 }
  0x20   :  { %384 = vperm.xlu0 %840, %v318_v15   ;;  %496 = vmatpush.msra.mxu1 %v465_v36 }
  0x21   :  { %212 = vmatpush.bf16.msra.mxu0 %v741_v14  ;;  %801 = vmatpush.bf16.msra.mxu3 %v741_v14  ;;  %v788_v14 = vld [vmem:[%s1085_s1 + $0x8] sm:$0xff]  }
  0x22   :  { %369 = vperm.xlu1 %841, %v315_v16   ;;  %389 = vperm.xlu2 %842, %v319_v27   ;;  %v762_v15 = vunpack.c.l.bf16 %v788_v14 }
  0x23   :  { %497 = vmatpush.msra.mxu1 %v464_v37  ;;  %559 = vmatpush.msra.mxu2 %v483_v52 }
  0x25   :  { %213 = vmatpush.bf16.msra.mxu0 %v740_v17  ;;  %802 = vmatpush.bf16.msra.mxu3 %v740_v17 }
  0x26   :  { %498 = vmatpush.msra.mxu1 %v463_v38  ;;  %560 = vmatpush.msra.mxu2 %v482_v54 }
  0x28   :  { %214 = vmatmul.bf16.vlgmr.msra.gmra.mxu0 %v748_v18  ;;  %244 = vmatmul.bf16.vlgmr.msra.gmra.mxu3 %v754_v19  ;;  %v763_v19 = vunpack.c.h.bf16 %v788_v14 }
  0x29   :  { %374 = vperm.xlu0 %840, %v316_v20   ;;  %803 = vmatpush.msrb.mxu3 %v470_v30 }
  0x2a   :  { %394 = vperm.xlu1 %841, %v320_v21   ;;  %379 = vperm.xlu2 %842, %v317_v29  }
  0x2b   :  { %804 = vmatpush.msrb.mxu3 %v469_v31  ;;  %499 = vmatpush.msra.mxu1 %v462_v39  ;;  %v767_v31 = vunpack.c.h.bf16 %v789_v24 }
  0x2c   :  { %561 = vmatpush.msra.mxu2 %v481_v55 }
  0x2d   :  { %805 = vmatpush.msrb.mxu3 %v468_v32  ;;  %500 = vmatpush.msra.mxu1 %v461_v40 }
  0x2e   :  { %562 = vmatpush.msra.mxu2 %v480_v56 }
  0x2f   :  { %806 = vmatpush.msrb.mxu3 %v467_v33  ;;  %501 = vmatpush.msra.mxu1 %v460_v41 }
  0x30   :  { %563 = vmatpush.msra.mxu2 %v479_v58 }
  0x31   :  { %399 = vperm.xlu0 %840, %v321_v23   ;;  %807 = vmatpush.msrb.mxu3 %v466_v34 }
  0x32   :  { %502 = vmatpush.msra.mxu1 %v459_v42  ;;  %564 = vmatpush.msra.mxu2 %v478_v59 }
  0x33   :  { %808 = vmatpush.msrb.mxu3 %v465_v36 }
  0x34   :  { %503 = vmatpush.msra.mxu1 %v458_v46  ;;  %565 = vmatpush.msra.mxu2 %v477_v61 }
  0x35   :  { %809 = vmatpush.msrb.mxu3 %v464_v37 }
  0x36   :  { %504 = vmatpush.msra.mxu1 %v457_v48  ;;  %566 = vmatpush.msra.mxu2 %v476_v62 }
  0x37   :  { %810 = vmatpush.msrb.mxu3 %v463_v38  ;;  %v790_v38 = vld [vmem:[%s1085_s1 + $0x18] sm:$0xff]  }
  0x38   :  { %219 = vmatmul.bf16.gmra.mxu0 %v749_v25  ;;  %249 = vmatmul.bf16.gmra.mxu3 %v755_v26  ;;  %v766_v25 = vunpack.c.l.bf16 %v789_v24 }
  0x39   :  { %811 = vmatpush.msrb.mxu3 %v462_v39  ;;  %505 = vmatpush.msra.mxu1 %v456_v49 }
  0x3a   :  { %567 = vmatpush.msra.mxu2 %v475_v0 }
  0x3b   :  { %812 = vmatpush.msrb.mxu3 %v461_v40  ;;  %506 = vmatpush.msra.mxu1 %v455_v50  ;;  %v770_v40 = vunpack.c.l.bf16 %v790_v38 }
  0x3c   :  { %568 = vmatpush.msra.mxu2 %v474_v1  ;;  %507 = vmatmul.f32.vlgmr.msra.gmra.mxu1 %v758_v8 }
  0x3d   :  { %813 = vmatpush.msrb.mxu3 %v460_v41 }
  0x3e   :  { %569 = vmatpush.msra.mxu2 %v473_v3 }
  0x3f   :  { %814 = vmatpush.msrb.mxu3 %v459_v42 }
  0x40   :  { %570 = vmatpush.msra.mxu2 %v472_v4 }
  0x41   :  { %815 = vmatpush.msrb.mxu3 %v458_v46  ;;  %v771_v46 = vunpack.c.h.bf16 %v790_v38 }
  0x42   :  { %571 = vmatpush.msra.mxu2 %v471_v6 }
  0x43   :  { %816 = vmatpush.msrb.mxu3 %v457_v48 }
  0x44   :  { %510 = vmatmul.f32.gmra.mxu1 %v759_v10 }
  0x45   :  { %817 = vmatpush.msrb.mxu3 %v456_v49 }
  0x47   :  { %818 = vmatpush.msrb.mxu3 %v455_v50 }
  0x48   :  { %224 = vmatmul.bf16.gmra.mxu0 %v750_v28  ;;  %543 = vmatmul.f32.vlgmr.msrb.gmra.mxu3 %v782_v53 }
  0x49   :  { %819 = vmatpush.msra.mxu3 %v486_v43 }
  0x4b   :  { %820 = vmatpush.msra.mxu3 %v485_v44 }
  0x4c   :  { %513 = vmatmul.f32.gmra.mxu1 %v762_v15  ;;  %v1060_v15 = vld [vmem:[%s1088_s4] ss:$0 sm:$0xff]  ;;  %s900_s4 = smov [#allocation6]  }
  0x4d   :  { %821 = vmatpush.msra.mxu3 %v484_v47  ;;  %s657_s6 = sshll.u32 %s900_s4, 4  ;;  %s658_s6 = int_to_ptr.vmem [resolvable:$true] %s657_s6 }
  0x4f   :  { %822 = vmatpush.msra.mxu3 %v483_v52  ;;  %v791_v52 = vld [vmem:[%s1085_s1 + $0x20] sm:$0xff]  }
  0x50   :  { %546 = vmatmul.f32.gmra.mxu3 %v783_v57  ;;  %v774_v53 = vunpack.c.l.bf16 %v791_v52 }
  0x51   :  { %823 = vmatpush.msra.mxu3 %v482_v54 }
  0x53   :  { %824 = vmatpush.msra.mxu3 %v481_v55 }
  0x54   :  { %516 = vmatmul.f32.gmra.mxu1 %v763_v19 }
  0x55   :  { %825 = vmatpush.msra.mxu3 %v480_v56  ;;  %v775_v56 = vunpack.c.h.bf16 %v791_v52 }
  0x57   :  { %826 = vmatpush.msra.mxu3 %v479_v58 }
  0x58   :  { %229 = vmatmul.bf16.gmra.mxu0 %v751_v35  ;;  %549 = vmatmul.f32.gmra.mxu3 %v786_v2 }
  0x59   :  { %827 = vmatpush.msra.mxu3 %v478_v59  ;;  %v792_v59 = vld [vmem:[%s1085_s1 + $0x28] sm:$0xff]  }
  0x5a   :  { %v779_v63 = vunpack.c.h.bf16 %v792_v59 }
  0x5b   :  { %828 = vmatpush.msra.mxu3 %v477_v61 }
  0x5c   :  { %519 = vmatmul.f32.gmra.mxu1 %v766_v25 }
  0x5d   :  { %829 = vmatpush.msra.mxu3 %v476_v62 }
  0x5f   :  { %830 = vmatpush.msra.mxu3 %v475_v0 }
  0x60   :  { %552 = vmatmul.f32.gmra.mxu3 %v787_v5 }
  0x61   :  { %831 = vmatpush.msra.mxu3 %v474_v1 }
  0x63   :  { %832 = vmatpush.msra.mxu3 %v473_v3 }
  0x64   :  { %v345_v12 = vpop.permute.xlu2 %344  ;;  %522 = vmatmul.f32.gmra.mxu1 %v767_v31 }
  0x65   :  { %833 = vmatpush.msra.mxu3 %v472_v4 }
  0x67   :  { %834 = vmatpush.msra.mxu3 %v471_v6 }
  0x68   :  { %234 = vmatmul.bf16.gmra.mxu0 %v752_v45 }
  0x6c   :  { %v350_v17 = vpop.permute.xlu2 %349  ;;  %525 = vmatmul.f32.gmra.mxu1 %v770_v40 }
  0x74   :  { %v365_v23 = vpop.permute.xlu2 %364  ;;  %528 = vmatmul.f32.gmra.mxu1 %v771_v46 }
  0x78   :  { %239 = vmatmul.bf16.gmra.mxu0 %v753_v60  ;;  %v778_v60 = vunpack.c.l.bf16 %v792_v59 }
  0x7a   :  { %v325_v9 = vpop.permute.xlu0 %324 }
  0x7c   :  { %v335_v11 = vpop.permute.xlu1 %334  ;;  %v390_v33 = vpop.permute.xlu2 %389  ;;  %531 = vmatmul.f32.gmra.mxu1 %v774_v53 }
  0x82   :  { %v330_v13 = vpop.permute.xlu0 %329 }
  0x84   :  { %v340_v16 = vpop.permute.xlu1 %339  ;;  %534 = vmatmul.f32.gmra.mxu1 %v775_v56  ;;  %v380_v6 = vpop.permute.xlu2 %379 }
  0x8a   :  { %v355_v18 = vpop.permute.xlu0 %354 }
  0x8c   :  { %v360_v22 = vpop.permute.xlu1 %359  ;;  %537 = vmatmul.f32.gmra.mxu1 %v778_v60 }
  0x92   :  { %v385_v26 = vpop.permute.xlu0 %384 }
  0x94   :  { %v370_v32 = vpop.permute.xlu1 %369  ;;  %540 = vmatmul.f32.gmra.mxu1 %v779_v63 }
  0x9b   :  { %v375_v39 = vpop.permute.xlu0 %374 }
  0x9c   :  { %v395_v41 = vpop.permute.xlu1 %394 }
  0xa3   :  { %v400_v47 = vpop.permute.xlu0 %399 }
  0xa5   :  { %v215_v20 = vpop.f32.mrf.mxu0 }
  0xa6   :  { %v402_v21 = vmul.f32 %v325_v9, %v215_v20 }
  0xa8   :  { %572 = vmatmul.f32.vlgmr.msra.gmra.mxu2 %v402_v21 }
  0xab   :  { %v245_v27 = vpop.f32.mrf.mxu3 }
  0xac   :  { %v414_v28 = vmul.f32 %v385_v26, %v245_v27 }
  0xad   :  { %v217_v29 = vpop.f32.mrf.mxu0 }
  0xae   :  { %v403_v30 = vmul.f32 %v330_v13, %v217_v29  ;;  %608 = vmatmul.f32.vlgmr.msra.gmra.mxu3 %v414_v28 }
  0xb0   :  { %575 = vmatmul.f32.gmra.mxu2 %v403_v30 }
  0xb3   :  { %v247_v34 = vpop.f32.mrf.mxu3 }
  0xb4   :  { %v415_v35 = vmul.f32 %v390_v33, %v247_v34 }
  0xb5   :  { %v220_v36 = vpop.f32.mrf.mxu0 }
  0xb6   :  { %v404_v37 = vmul.f32 %v335_v11, %v220_v36  ;;  %611 = vmatmul.f32.gmra.mxu3 %v415_v35 }
  0xb8   :  { %578 = vmatmul.f32.gmra.mxu2 %v404_v37 }
  0xb9   :  { %v508_v10 = vpop.f32.mrf.mxu1 }
  0xbb   :  { %v250_v42 = vpop.f32.mrf.mxu3 }
  0xbc   :  { %v416_v43 = vmul.f32 %v395_v41, %v250_v42 }
  0xbd   :  { %v222_v44 = vpop.f32.mrf.mxu0 }
  0xbe   :  { %v405_v45 = vmul.f32 %v340_v16, %v222_v44  ;;  %614 = vmatmul.f32.gmra.mxu3 %v416_v43 }
  0xc0   :  { %581 = vmatmul.f32.gmra.mxu2 %v405_v45 }
  0xc3   :  { %v252_v48 = vpop.f32.mrf.mxu3 }
  0xc4   :  { %v417_v49 = vmul.f32 %v400_v47, %v252_v48 }
  0xc5   :  { %v225_v50 = vpop.f32.mrf.mxu0 }
  0xc6   :  { %v406_v51 = vmul.f32 %v345_v12, %v225_v50  ;;  %617 = vmatmul.f32.gmra.mxu3 %v417_v49  ;;  %v511_v12 = vpop.f32.mrf.mxu1 }
  0xc8   :  { %584 = vmatmul.f32.gmra.mxu2 %v406_v51 }
  0xcb   :  { %v544_v9 = vpop.f32.mrf.mxu3 }
  0xcc   :  { %v545_v21 = vadd.f32 %v1060_v15, %v544_v9 }
  0xcd   :  { %v227_v54 = vpop.f32.mrf.mxu0 }
  0xce   :  { %v407_v55 = vmul.f32 %v350_v17, %v227_v54  ;;  %v514_v14 = vpop.f32.mrf.mxu1  ;;  %v509_v17 = vadd.f32 %v1060_v15, %v508_v10 }
  0xd0   :  { %587 = vmatmul.f32.gmra.mxu2 %v407_v55 }
  0xd3   :  { %v547_v11 = vpop.f32.mrf.mxu3 }
  0xd4   :  { %v548_v29 = vadd.f32 %v1060_v15, %v547_v11 }
  0xd5   :  { %v230_v57 = vpop.f32.mrf.mxu0 }
  0xd6   :  { %v408_v58 = vmul.f32 %v355_v18, %v230_v57  ;;  %v517_v20 = vpop.f32.mrf.mxu1 }
  0xd7   :  { %v518_v40 = vadd.f32 %v1060_v15, %v517_v20 }
  0xd8   :  { %590 = vmatmul.f32.gmra.mxu2 %v408_v58 }
  0xdb   :  { %v550_v13 = vpop.f32.mrf.mxu3 }
  0xdc   :  { %v551_v38 = vadd.f32 %v1060_v15, %v550_v13 }
  0xdd   :  { %v232_v61 = vpop.f32.mrf.mxu0 }
  0xde   :  { %v409_v62 = vmul.f32 %v360_v22, %v232_v61  ;;  %v520_v31 = vpop.f32.mrf.mxu1 }
  0xdf   :  { %v521_v49 = vadd.f32 %v1060_v15, %v520_v31 }
  0xe0   :  { %593 = vmatmul.f32.gmra.mxu2 %v409_v62 }
  0xe3   :  { %v553_v16 = vpop.f32.mrf.mxu3 }
  0xe4   :  { %v554_v47 = vadd.f32 %v1060_v15, %v553_v16 }
  0xe5   :  { %v235_v0 = vpop.f32.mrf.mxu0 }
  0xe6   :  { %v410_v1 = vmul.f32 %v365_v23, %v235_v0  ;;  %v512_v23 = vadd.f32 %v1060_v15, %v511_v12  ;;  %v523_v42 = vpop.f32.mrf.mxu1 }
  0xe7   :  { %v524_v57 = vadd.f32 %v1060_v15, %v523_v42 }
  0xe8   :  { %596 = vmatmul.f32.gmra.mxu2 %v410_v1 }
  0xed   :  { %v237_v2 = vpop.f32.mrf.mxu0 }
  0xee   :  { %v411_v3 = vmul.f32 %v370_v32, %v237_v2  ;;  %v515_v32 = vadd.f32 %v1060_v15, %v514_v14  ;;  %v526_v53 = vpop.f32.mrf.mxu1 }
  0xef   :  { %v527_v62 = vadd.f32 %v1060_v15, %v526_v53 }
  0xf0   :  { %599 = vmatmul.f32.gmra.mxu2 %v411_v3 }
  0xf5   :  { %v240_v4 = vpop.f32.mrf.mxu0 }
  0xf6   :  { %v412_v5 = vmul.f32 %v375_v39, %v240_v4  ;;  %v529_v60 = vpop.f32.mrf.mxu1 }
  0xf7   :  { %v530_v3 = vadd.f32 %v1060_v15, %v529_v60 }
  0xf8   :  { %602 = vmatmul.f32.gmra.mxu2 %v412_v5 }
  0xfd   :  { %v242_v7 = vpop.f32.mrf.mxu0 }
  0xfe   :  { %v413_v8 = vmul.f32 %v380_v6, %v242_v7  ;;  %v532_v2 = vpop.f32.mrf.mxu1 }
  0xff   :  { %v533_v7 = vadd.f32 %v1060_v15, %v532_v2 }
 0x100   :  { %605 = vmatmul.f32.gmra.mxu2 %v413_v8 }
 0x106   :  { %v535_v8 = vpop.f32.mrf.mxu1 }
 0x107   :  { %v536_v12 = vadd.f32 %v1060_v15, %v535_v8 }
 0x10e   :  { %v538_v14 = vpop.f32.mrf.mxu1 }
 0x12b   :  { %v573_v18 = vpop.f32.mrf.mxu2 }
 0x12c   :  { %v574_v19 = vadd.f32 %v573_v18, %v509_v17  ;;  %v539_v18 = vadd.f32 %v1060_v15, %v538_v14 }
 0x12e   :  { %v621_v22 = vmax.f32 %v574_v19, 0.0 }
 0x130   :  { %637 = vst [vmem:[#allocation6] sm:$0xff] %v621_v22 }
 0x131   :  { %v609_v24 = vpop.f32.mrf.mxu3 }
 0x132   :  { %v610_v25 = vadd.f32 %v609_v24, %v545_v21  ;;  %v541_v21 = vpop.f32.mrf.mxu1 }
 0x133   :  { %v576_v26 = vpop.f32.mrf.mxu2 }
 0x134   :  { %v633_v27 = vmax.f32 %v610_v25, 0.0  ;;  %v577_v28 = vadd.f32 %v576_v26, %v512_v23  ;;  %v542_v23 = vadd.f32 %v1060_v15, %v541_v21 }
 0x136   :  { %649 = vst [vmem:[#allocation6 + $0x60] sm:$0xff] %v633_v27  ;;  %v622_v30 = vmax.f32 %v577_v28, 0.0 }
 0x138   :  { %638 = vst [vmem:[#allocation6 + $0x8] sm:$0xff] %v622_v30 }
 0x139   :  { %v612_v33 = vpop.f32.mrf.mxu3 }
 0x13a   :  { %v613_v34 = vadd.f32 %v612_v33, %v548_v29 }
 0x13b   :  { %v579_v35 = vpop.f32.mrf.mxu2 }
 0x13c   :  { %v634_v36 = vmax.f32 %v613_v34, 0.0  ;;  %v580_v37 = vadd.f32 %v579_v35, %v515_v32 }
 0x13e   :  { %650 = vst [vmem:[#allocation6 + $0x68] sm:$0xff] %v634_v36  ;;  %v623_v39 = vmax.f32 %v580_v37, 0.0 }
 0x140   :  { %639 = vst [vmem:[#allocation6 + $0x10] sm:$0xff] %v623_v39 }
 0x141   :  { %v615_v41 = vpop.f32.mrf.mxu3 }
 0x142   :  { %v616_v43 = vadd.f32 %v615_v41, %v551_v38 }
 0x143   :  { %v582_v44 = vpop.f32.mrf.mxu2 }
 0x144   :  { %v635_v45 = vmax.f32 %v616_v43, 0.0  ;;  %v583_v46 = vadd.f32 %v582_v44, %v518_v40 }
 0x146   :  { %651 = vst [vmem:[#allocation6 + $0x70] sm:$0xff] %v635_v45  ;;  %v624_v48 = vmax.f32 %v583_v46, 0.0 }
 0x148   :  { %640 = vst [vmem:[#allocation6 + $0x18] sm:$0xff] %v624_v48 }
 0x149   :  { %v618_v50 = vpop.f32.mrf.mxu3 }
 0x14a   :  { %v619_v51 = vadd.f32 %v618_v50, %v554_v47 }
 0x14b   :  { %v585_v52 = vpop.f32.mrf.mxu2 }
 0x14c   :  { %v636_v54 = vmax.f32 %v619_v51, 0.0  ;;  %v586_v55 = vadd.f32 %v585_v52, %v521_v49 }
 0x14e   :  { %652 = vst [vmem:[#allocation6 + $0x78] sm:$0xff] %v636_v54  ;;  %v625_v56 = vmax.f32 %v586_v55, 0.0 }
 0x150   :  { %641 = vst [vmem:[#allocation6 + $0x20] sm:$0xff] %v625_v56 }
 0x153   :  { %v588_v58 = vpop.f32.mrf.mxu2 }
 0x154   :  { %v589_v59 = vadd.f32 %v588_v58, %v524_v57 }
 0x156   :  { %v626_v61 = vmax.f32 %v589_v59, 0.0 }
 0x158   :  { %642 = vst [vmem:[#allocation6 + $0x28] sm:$0xff] %v626_v61 }
 0x15b   :  { %v591_v63 = vpop.f32.mrf.mxu2 }
 0x15c   :  { %v592_v0 = vadd.f32 %v591_v63, %v527_v62 }
 0x15e   :  { %v627_v1 = vmax.f32 %v592_v0, 0.0 }
 0x160   :  { %643 = vst [vmem:[#allocation6 + $0x30] sm:$0xff] %v627_v1 }
 0x163   :  { %v594_v4 = vpop.f32.mrf.mxu2 }
 0x164   :  { %v595_v5 = vadd.f32 %v594_v4, %v530_v3 }
 0x166   :  { %v628_v6 = vmax.f32 %v595_v5, 0.0 }
 0x168   :  { %644 = vst [vmem:[#allocation6 + $0x38] sm:$0xff] %v628_v6 }
 0x16b   :  { %v597_v9 = vpop.f32.mrf.mxu2 }
 0x16c   :  { %v598_v10 = vadd.f32 %v597_v9, %v533_v7 }
 0x16e   :  { %v629_v11 = vmax.f32 %v598_v10, 0.0 }
 0x170   :  { %645 = vst [vmem:[#allocation6 + $0x40] sm:$0xff] %v629_v11 }
 0x173   :  { %v600_v13 = vpop.f32.mrf.mxu2 }
 0x174   :  { %v601_v16 = vadd.f32 %v600_v13, %v536_v12 }
 0x176   :  { %v630_v17 = vmax.f32 %v601_v16, 0.0 }
 0x178   :  { %646 = vst [vmem:[#allocation6 + $0x48] sm:$0xff] %v630_v17 }
 0x17b   :  { %v603_v19 = vpop.f32.mrf.mxu2 }
 0x17c   :  { %v604_v20 = vadd.f32 %v603_v19, %v539_v18 }
 0x17e   :  { %v631_v22 = vmax.f32 %v604_v20, 0.0 }
 0x180   :  { %647 = vst [vmem:[#allocation6 + $0x50] sm:$0xff] %v631_v22 }
 0x183   :  { %v606_v24 = vpop.f32.mrf.mxu2 }
 0x184   :  { %v607_v25 = vadd.f32 %v606_v24, %v542_v23 }
 0x186   :  { %v632_v26 = vmax.f32 %v607_v25, 0.0 }
 0x188   :  { %648 = vst [vmem:[#allocation6 + $0x58] sm:$0xff] %v632_v26 }
 0x189   :  { %665 = dma.vmem_to_hbm [thread:$0]  %s658_s6, 2048, %s660_s9, [#allocation5], %s897_s23, %s897_s23, %s898_s24  }
 0x18a   :  { %894 = dma.done.wait [#allocation5], 2048  }
 0x18b   :  { %895 = vsyncadd [#allocation5], 4294965248 }
 0x18c   :  { %670 = vsyncpa [#allocation4], 1 }
 0x18d   :  { %671 = vsyncpa [#allocation5], 1 }

</bundles_post_ra>
